<compile_context>
chip_gen: v5e
topology: v5e:2x2
jax: 0.10.0
libtpu: 0.0.40
codegen_flags: <defaults>
</compile_context>

<pallas_src>
import jax
import jax.numpy as jnp
from jax.experimental import pallas as pl
from jax.experimental.pallas import tpu as pltpu


def _conv1x1_relu_kernel(x_ref, w_ref, b_ref, o_ref):
    """One (Cout, t_hw) output tile: relu(W @ X + b), fully fused, no scratch."""
    # x_ref: (Cin, t_hw), w_ref: (Cout, Cin), b_ref: (Cout, 1), o_ref: (Cout, t_hw)
    acc = jnp.dot(w_ref[...], x_ref[...], preferred_element_type=jnp.float32)
    o_ref[...] = jnp.maximum(acc + b_ref[...], 0.0).astype(o_ref.dtype)


def _round_up(x, m):
    return ((x + m - 1) // m) * m


def _pick_tile_hw(hw, cin, cout, *, vmem_budget_bytes=12 * 1024 * 1024, max_tile=2048):
    """Largest spatial tile (multiple of 128) whose double-buffered working set fits budget.

    Budget is kept conservative (12 MiB) so the tiles fit the default scoped VMEM on
    v5e (16 MiB) and leave ample headroom on v6e/v7x (32 MiB scoped limit requested below).
    """
    bytes_per = 4  # f32
    fixed = 2 * bytes_per * (cin * cout + cout)      # W + bias blocks (grid-invariant)
    per_col = 2 * bytes_per * (cin + cout)           # one spatial column of x + out, x2 buffers
    t = max(128, (vmem_budget_bytes - fixed) // per_col)
    t = min(int(t), max_tile)
    t = max(128, (t // 128) * 128)
    return min(t, _round_up(hw, 128))


def conv1x1_relu_pallas(x3d, weight2d, bias):
    """x3d: (N, Cin, HW) f32, weight2d: (Cout, Cin) f32, bias: (Cout,) f32 -> (N, Cout, HW)."""
    N, Cin, HW = x3d.shape
    Cout, Cin_w = weight2d.shape
    assert Cin == Cin_w

    t_hw = _pick_tile_hw(HW, Cin, Cout)
    HW_pad = _round_up(HW, t_hw)
    if HW_pad != HW:
        # Zero-pad the spatial axis; padded columns are sliced off after the kernel.
        x3d = jnp.pad(x3d, ((0, 0), (0, 0), (0, HW_pad - HW)))

    b2d = bias.reshape(Cout, 1)  # broadcasts over the (lane) spatial axis inside the kernel

    grid = (N, HW_pad // t_hw)

    cost = pl.CostEstimate(
        flops=2 * N * HW_pad * Cin * Cout,
        transcendentals=0,
        bytes_accessed=4 * (N * HW_pad * Cin + Cin * Cout + Cout + N * HW_pad * Cout),
    )

    out = pl.pallas_call(
        _conv1x1_relu_kernel,
        out_shape=jax.ShapeDtypeStruct((N, Cout, HW_pad), x3d.dtype),
        grid_spec=pltpu.PrefetchScalarGridSpec(
            num_scalar_prefetch=0,
            grid=grid,
            in_specs=[
                # x tile: batch dim squeezed, full Cin, t_hw spatial columns.
                pl.BlockSpec((None, Cin, t_hw), lambda b, s: (b, 0, s)),
                # Weight: single resident block (grid-invariant index map -> no re-DMA).
                pl.BlockSpec((Cout, Cin), lambda b, s: (0, 0)),
                # Bias: single resident block.
                pl.BlockSpec((Cout, 1), lambda b, s: (0, 0)),
            ],
            out_specs=pl.BlockSpec((None, Cout, t_hw), lambda b, s: (b, 0, s)),
        ),
        compiler_params=pltpu.CompilerParams(
            dimension_semantics=("parallel", "parallel"),
            vmem_limit_bytes=32 * 1024 * 1024,
        ),
        cost_estimate=cost,
    )(x3d, weight2d, b2d)

    if HW_pad != HW:
        out = out[:, :, :HW]
    return out


def dec_single_conv_forward(x_nchw, weight, bias):
    """Forward pass matching DecSingleConv: relu(conv1x1(x) + bias), NCHW in / NCHW out.

    x_nchw: (N, Cin, H, W); weight: (Cout, Cin, 1, 1); bias: (Cout,).
    """
    N, Cin, H, W = x_nchw.shape
    Cout = weight.shape[0]

    x3d = x_nchw.reshape(N, Cin, H * W)          # pure view, no transpose
    w2d = weight.reshape(Cout, Cin)

    out3d = conv1x1_relu_pallas(x3d, w2d, bias)  # (N, Cout, H*W), already NCHW layout
    return out3d.reshape(N, Cout, H, W)


if __name__ == "__main__":
    # Small shapes consistent with the module (1x1 conv + bias + ReLU).
    # H*W deliberately not a multiple of 128 to exercise the padding/slicing path.
    batch, inpdim, outdim, H, W = 2, 128, 256, 10, 10

    key = jax.random.PRNGKey(0)
    kx, kw, kb = jax.random.split(key, 3)

    x = jax.random.normal(kx, (batch, inpdim, H, W), dtype=jnp.float32)
    # Deterministic synthetic parameters (matches nn.Conv2d param shapes).
    weight = jax.random.normal(kw, (outdim, inpdim, 1, 1), dtype=jnp.float32) * 0.05
    bias = jax.random.normal(kb, (outdim,), dtype=jnp.float32) * 0.01

    out = dec_single_conv_forward(x, weight, bias)
    out = jax.block_until_ready(out)

    # Reference in plain JAX (per-pixel channel matmul + bias + relu), no transposes needed.
    ref = jnp.maximum(
        jnp.einsum("oi,nihw->nohw", weight.reshape(outdim, inpdim), x)
        + bias.reshape(1, outdim, 1, 1),
        0.0,
    )
    assert out.shape == (batch, outdim, H, W)
    assert jnp.allclose(out, ref, atol=1e-3, rtol=1e-3)

    print("KERNEL_OK")
</pallas_src>

<mosaic_0001>
module attributes {stable_mosaic.version = 11 : i64} {
  func.func @_conv1x1_relu_kernel(%arg0: i32, %arg1: i32, %arg2: memref<1x128x128xf32, #tpu.memory_space<vmem>>, %arg3: memref<256x128xf32, #tpu.memory_space<vmem>>, %arg4: memref<256x1xf32, #tpu.memory_space<vmem>>, %arg5: memref<1x256x128xf32, #tpu.memory_space<vmem>>) attributes {dimension_semantics = [#tpu.dimension_semantics<parallel>, #tpu.dimension_semantics<parallel>], iteration_bounds = array<i64: 2, 1>, scalar_prefetch = 0 : i64, scratch_operands = 0 : i64, tpu.core_type = #tpu.core_type<tc>, window_params = [{transform_indices = @transform_0, window_bounds = array<i64: 1, 128, 128>}, {pipeline_mode = #tpu.pipeline_mode<synchronous>, transform_indices = @transform_1, window_bounds = array<i64: 256, 128>}, {pipeline_mode = #tpu.pipeline_mode<synchronous>, transform_indices = @transform_2, window_bounds = array<i64: 256, 1>}, {transform_indices = @transform_3, window_bounds = array<i64: 1, 256, 128>}]} {
    %c0 = arith.constant 0 : index
    %c0_0 = arith.constant 0 : index
    %0 = vector.load %arg3[%c0, %c0_0] : memref<256x128xf32, #tpu.memory_space<vmem>>, vector<256x128xf32>
    %c0_1 = arith.constant 0 : index
    %c0_2 = arith.constant 0 : index
    %c0_3 = arith.constant 0 : index
    %1 = vector.load %arg2[%c0_1, %c0_2, %c0_3] : memref<1x128x128xf32, #tpu.memory_space<vmem>>, vector<1x128x128xf32>
    %2 = vector.shape_cast %1 : vector<1x128x128xf32> to vector<128x128xf32>
    %cst = arith.constant dense<0.000000e+00> : vector<256x128xf32>
    %3 = tpu.matmul %0, %2, %cst {dimension_numbers = #tpu.dot_dimension_numbers<[1], [0], [0], [1], [0, 0, 1, 1], [], []>} : vector<256x128xf32>, vector<128x128xf32>, vector<256x128xf32> -> vector<256x128xf32>
    %c0_4 = arith.constant 0 : index
    %c0_5 = arith.constant 0 : index
    %4 = vector.load %arg4[%c0_4, %c0_5] : memref<256x1xf32, #tpu.memory_space<vmem>>, vector<256x1xf32>
    %5 = vector.broadcast %4 : vector<256x1xf32> to vector<256x128xf32>
    %6 = arith.addf %3, %5 : vector<256x128xf32>
    %cst_6 = arith.constant 0.000000e+00 : f32
    %7 = vector.broadcast %cst_6 : f32 to vector<256x128xf32>
    %8 = arith.maximumf %6, %7 : vector<256x128xf32>
    %c0_7 = arith.constant 0 : index
    %c0_8 = arith.constant 0 : index
    %c0_9 = arith.constant 0 : index
    %9 = vector.load %arg5[%c0_7, %c0_8, %c0_9] : memref<1x256x128xf32, #tpu.memory_space<vmem>>, vector<1x256x128xf32>
    %10 = vector.shape_cast %9 : vector<1x256x128xf32> to vector<256x128xf32>
    %11 = vector.shape_cast %8 : vector<256x128xf32> to vector<1x256x128xf32>
    tpu.vector_store %arg5[%c0_7, %c0_8, %c0_9], %11 {strides = array<i32>} : memref<1x256x128xf32, #tpu.memory_space<vmem>>, vector<1x256x128xf32>,
    return
  }
  func.func @transform_0(%arg0: i32, %arg1: i32) -> (i32, i32, i32) {
    %c0_i32 = arith.constant 0 : i32
    %c0_i32_0 = arith.constant 0 : i32
    return %arg0, %c0_i32, %arg1 : i32, i32, i32
  }
  func.func @transform_1(%arg0: i32, %arg1: i32) -> (i32, i32) {
    %c0_i32 = arith.constant 0 : i32
    %c0_i32_0 = arith.constant 0 : i32
    %c0_i32_1 = arith.constant 0 : i32
    return %c0_i32, %c0_i32_0 : i32, i32
  }
  func.func @transform_2(%arg0: i32, %arg1: i32) -> (i32, i32) {
    %c0_i32 = arith.constant 0 : i32
    %c0_i32_0 = arith.constant 0 : i32
    %c0_i32_1 = arith.constant 0 : i32
    return %c0_i32, %c0_i32_0 : i32, i32
  }
  func.func @transform_3(%arg0: i32, %arg1: i32) -> (i32, i32, i32) {
    %c0_i32 = arith.constant 0 : i32
    %c0_i32_0 = arith.constant 0 : i32
    return %arg0, %c0_i32, %arg1 : i32, i32, i32
  }
}

</mosaic_0001>

<bundles_post_ra>
// kernel: tpu_custom_call.1
= control target key start
LH: loop header
LB: loop body
LE: loop exit
PB: predicated region body
PF: predicated region fallthrough
CT: control target
= control target key end

     0   :  { %8 = vsyncpa [#allocation3], 0  ;;  %s1309_s0 = inlined_call_operand.vmem [shape: f32[2,128,128], index: 0, kind: input, shape index: {}]   ;;  %s1310_s1 = inlined_call_operand.hbm [shape: f32[256,128], index: 1, kind: input, shape index: {}]   ;;  %s1311_s2 = inlined_call_operand.vmem [shape: f32[256,1], index: 2, kind: input, shape index: {}]   ;;  %s1312_s3 = inlined_call_operand.hbm [shape: f32[2,256,128], index: 3, kind: output, shape index: {}]  }
   0x1   :  { %9 = vsyncpa [#allocation4], 0 }
   0x2   :  { %11 = vsyncpa [#allocation4 + $0x1], 0  ;;  %s1014_s12 = smov 0   ;;  %s1016_s13 = smov 0  }
   0x3   :  { %s1018_s14 = smov 0   ;;  %s1020_s15 = smov 0  }
   0x4   :  { %s1022_s16 = smov 0   ;;  %s1024_s17 = smov 0  }
   0x5 LB: > { %s735_s18 = sadd.s32 4294967295, %s986_s17   ;;  %s736_s19 = sadd.s32 4294967294, %s986_s17   ;;  %s986_s17 = sphi %s1024_s17, %s17_s17   ;;  %s982_s16 = sphi %s1022_s16, %s1319_s16   ;;  %s978_s15 = sphi %s1020_s15, %s1318_s15   ;;  %s974_s14 = sphi %s1018_s14, %s1317_s14   ;;  %s970_s13 = sphi %s1016_s13, %s1316_s13   ;;  %s966_s12 = sphi %s1014_s12, %s1315_s12  }
   0x6   : > { %s29_s20 = sadd.s32 1, %s982_s16  ;;  %s108_s21 = sadd.s32 1, %s974_s14 }
   0x7   : > { %p31_p0 = scmp.ge.s32.totalorder %s29_s20, 2  ;;  %p118_p1 = scmp.ne.s32.totalorder %s974_s14, %s970_s13 }
   0x8   : > { %p119_p2 = scmp.eq.s32.totalorder %s735_s18, 1  ;;  %p124_p3 = scmp.ne.s32.totalorder %s970_s13, %s966_s12 }
   0x9   : > { %s1321_s20 = smov (%p31_p0, %s29_s20), 0  ;;  %p125_p5 = scmp.eq.s32.totalorder %s736_s19, 1 }
   0xa   : > { %p1054_p4 = por %p119_p2, %p118_p1  ;;  %s103_s23 = ssub.s32 %s982_s16, %s1321_s20 }
   0xb   : > { %p737_p6 = scmp.ge.s32.totalorder %s986_s17, 1  ;;  %p106_p7 = scmp.eq.s32.totalorder %s103_s23, 0 }
   0xc   : > { %p1061_p8 = por %p125_p5, %p124_p3  ;;  %p132_p9 = scmp.lt.s32.totalorder %s986_s17, 3 }
   0xd   : > { %s1067_s25 = scalar_select %p106_p7, %s974_s14, %s108_s21  }
   0xe   : > { %p133_p10 = pnand %p737_p6, %p132_p9  ;;  %p814_p11 = scmp.eq.s32.totalorder %s735_s18, 0 }
   0xf   : > { %s143_s28 = sshll.u32 %s1310_s1, 4  ;;  %s988_s29 = smov [#allocation2]   ;;  %s144_s28 = int_to_ptr.hbm [resolvable:$true] %s143_s28 }
  0x10   : > { %p806_p12 = pneg %p133_p10  ;;  %s145_s30 = sshll.u32 %s988_s29, 4  ;;  %s146_s30 = int_to_ptr.vmem [resolvable:$true] %s145_s30 }
  0x11   : > { %s989_s4 = smov 128   ;;  %s990_s5 = smov 8  }
  0x12   : > { %p807_p13 = pnand %p814_p11, %p806_p12  ;;  %175 = sbr.rel (%p133_p10) target bundleno = 266 (0x10a), region = 32 }
  0x14   : > { %809 = dma.hbm_to_vmem [thread:$0]  (!%p807_p13), %s144_s28, 4096, %s146_s30, [#allocation3], %s989_s4, %s989_s4, %s990_s5  }
  0x17   : > { %957 = dma.done.wait (%p814_p11), [#allocation3], 4096  }
  0x18   : > { %959 = vsyncadd (%p814_p11), [#allocation3], 4294963200  ;;  %p203_p0 = scmp.lt.s32.totalorder %s978_s15, 1  ;;  %v991_v0 = vmov 0   ;;  %v263_v1 = vld [vmem:[%s1311_s2 + $0x20] sm:$0xff]  ;;  %v261_v2 = vld [vmem:[%s1311_s2 + $0x10] sm:$0xff] }
  0x19   : > { %873 = vset.pattern.permute.xlu2 %v991_v0  ;;  %872 = vset.pattern.permute.xlu1 %v991_v0  ;;  %v259_v3 = vld [vmem:[%s1311_s2] sm:$0xff]  ;;  %v264_v8 = vld [vmem:[%s1311_s2 + $0x28] sm:$0xff]  ;;  %v262_v9 = vld [vmem:[%s1311_s2 + $0x18] sm:$0xff]  ;;  %s751_s11 = sshll.u32 %s978_s15, 8  ;;  %s924_s4 = scalar_lea.hbm %s1312_s3, 512 }
  0x1a   : > { %871 = vset.pattern.permute.xlu0 %v991_v0  ;;  %s204_s6 = scalar_select %p203_p0, %s978_s15, 1  ;;  %313 = vperm.xlu2 %873, %v263_v1   ;;  %v260_v10 = vld [vmem:[%s1311_s2 + $0x8] sm:$0xff]  ;;  %v267_v15 = vld [vmem:[%s1311_s2 + $0x40] sm:$0xff]  ;;  %v266_v16 = vld [vmem:[%s1311_s2 + $0x38] sm:$0xff] }
  0x1b   : > { %303 = vperm.xlu1 %872, %v261_v2   ;;  %293 = vperm.xlu0 %871, %v259_v3   ;;  %v265_v17 = vld [vmem:[%s1311_s2 + $0x30] sm:$0xff]  ;;  %v270_v22 = vld [vmem:[%s1311_s2 + $0x58] sm:$0xff]  ;;  %v268_v24 = vld [vmem:[%s1311_s2 + $0x48] sm:$0xff]  ;;  %s641_s21 = scalar_lea.hbm %s1312_s3, %s751_s11 }
  0x1c   : > { %s750_s7 = sshll.u32 %s204_s6, 7  ;;  %v269_v23 = vld [vmem:[%s1311_s2 + $0x50] sm:$0xff]  ;;  %v211_v29 = vld [vmem:[#allocation2] sm:$0xff]  ;;  %v272_v34 = vld [vmem:[%s1311_s2 + $0x68] sm:$0xff]  ;;  %s644_s15 = sshll.u32 %s641_s21, 4  ;;  %s645_s15 = int_to_ptr.hbm [resolvable:$true] %s644_s15 }
  0x1d   : > { %s1077_s10 = scalar_lea.vmem %s1309_s0, %s750_s7  ;;  %v219_v30 = vld [vmem:[#allocation2 + $0x40] sm:$0xff]  ;;  %v273_v33 = vld [vmem:[%s1311_s2 + $0x70] sm:$0xff]  ;;  %v212_v36 = vld [vmem:[#allocation2 + $0x8] sm:$0xff]  ;;  %s200_s7 = sand.u32 1, %s970_s13  }
  0x1e   : > { %v258_v4 = vld [vmem:[%s1077_s10 + $0x78] sm:$0xff]  ;;  %v257_v5 = vld [vmem:[%s1077_s10 + $0x70] sm:$0xff]  ;;  %v256_v6 = vld [vmem:[%s1077_s10 + $0x68] sm:$0xff]  ;;  %s742_s8 = sshll.u32 %s200_s7, 8  ;;  %s629_s26 = scalar_lea.sflag [#allocation4], %s200_s7 }
  0x1f   : > { %451 = vmatpush.msra.mxu0 %v258_v4  ;;  %752 = vmatpush.msra.mxu1 %v258_v4  ;;  %v255_v7 = vld [vmem:[%s1077_s10 + $0x60] sm:$0xff]  ;;  %v254_v11 = vld [vmem:[%s1077_s10 + $0x58] sm:$0xff]  ;;  %v253_v12 = vld [vmem:[%s1077_s10 + $0x50] sm:$0xff]  ;;  %s1216_s9 = scalar_lea.vmem [#allocation5], %s742_s8  ;;  %s918_s27 = sshra.s32 %s645_s15, 4  ;;  %s919_s27 = int_to_ptr.hbm [resolvable:$true] %s918_s27 }
  0x20   : > { %753 = vmatpush.msra.mxu2 %v258_v4  ;;  %754 = vmatpush.msra.mxu3 %v258_v4  ;;  %v252_v13 = vld [vmem:[%s1077_s10 + $0x48] sm:$0xff]  ;;  %v251_v14 = vld [vmem:[%s1077_s10 + $0x40] sm:$0xff]  ;;  %v250_v18 = vld [vmem:[%s1077_s10 + $0x38] sm:$0xff]  ;;  %s642_s23 = sshll.u32 %s1216_s9, 4  ;;  %s920_s28 = scalar_lea.hbm %s919_s27, 256  ;;  %s643_s23 = int_to_ptr.vmem [resolvable:$true] %s642_s23 }
  0x21   : > { %452 = vmatpush.msra.mxu0 %v257_v5  ;;  %755 = vmatpush.msra.mxu1 %v257_v5  ;;  %v249_v19 = vld [vmem:[%s1077_s10 + $0x30] sm:$0xff]  ;;  %v248_v20 = vld [vmem:[%s1077_s10 + $0x28] sm:$0xff]  ;;  %v247_v21 = vld [vmem:[%s1077_s10 + $0x20] sm:$0xff]  ;;  %p921_p1 = scmp.ne.s32.totalorder %s919_s27, %s920_s28  ;;  %p925_p5 = scmp.lt.s32.totalorder %s919_s27, %s1312_s3 }
  0x22   : > { %756 = vmatpush.msra.mxu2 %v257_v5  ;;  %757 = vmatpush.msra.mxu3 %v257_v5  ;;  %v246_v25 = vld [vmem:[%s1077_s10 + $0x18] sm:$0xff]  ;;  %v245_v26 = vld [vmem:[%s1077_s10 + $0x10] sm:$0xff]  ;;  %v244_v27 = vld [vmem:[%s1077_s10 + $0x8] sm:$0xff]  ;;  %p926_p6 = scmp.lt.s32.totalorder %s924_s4, %s920_s28 }
  0x23   : > { %453 = vmatpush.msra.mxu0 %v256_v6  ;;  %758 = vmatpush.msra.mxu1 %v256_v6  ;;  %v243_v28 = vld [vmem:[%s1077_s10] sm:$0xff]  ;;  %v220_v37 = vld [vmem:[#allocation2 + $0x48] sm:$0xff]  ;;  %v274_v42 = vld [vmem:[%s1311_s2 + $0x78] sm:$0xff]  ;;  %p922_p2 = pnand %p921_p1, %p1054_p4 }
  0x24   : > { %759 = vmatpush.msra.mxu2 %v256_v6  ;;  %760 = vmatpush.msra.mxu3 %v256_v6  ;;  %v227_v31 = vld [vmem:[#allocation2 + $0x80] sm:$0xff]  ;;  %v228_v38 = vld [vmem:[#allocation2 + $0x88] sm:$0xff]  ;;  %v213_v43 = vld [vmem:[#allocation2 + $0x10] sm:$0xff]  ;;  %p927_p7 = por %p926_p6, %p925_p5 }
  0x25   : > { %454 = vmatpush.msra.mxu0 %v255_v7  ;;  %761 = vmatpush.msra.mxu1 %v255_v7  ;;  %v235_v32 = vld [vmem:[#allocation2 + $0xc0] sm:$0xff]  ;;  %v236_v39 = vld [vmem:[#allocation2 + $0xc8] sm:$0xff]  ;;  %v221_v44 = vld [vmem:[#allocation2 + $0x50] sm:$0xff]  ;;  %p923_p3 = pneg %p922_p2 }
  0x26   : > { %762 = vmatpush.msra.mxu2 %v255_v7  ;;  %763 = vmatpush.msra.mxu3 %v255_v7  ;;  %v271_v35 = vld [vmem:[%s1311_s2 + $0x60] sm:$0xff]  ;;  %v276_v40 = vld [vmem:[%s1311_s2 + $0x88] sm:$0xff]  ;;  %v229_v45 = vld [vmem:[#allocation2 + $0x90] sm:$0xff] }
  0x27   : > { %318 = vperm.xlu2 %873, %v264_v8   ;;  %308 = vperm.xlu1 %872, %v262_v9   ;;  %v275_v41 = vld [vmem:[%s1311_s2 + $0x80] sm:$0xff]  ;;  %v237_v46 = vld [vmem:[#allocation2 + $0xd0] sm:$0xff]  ;;  %v278_v48 = vld [vmem:[%s1311_s2 + $0x98] sm:$0xff]  ;;  %p928_p9 = pnand %p927_p7, %p923_p3 }
  0x28   : > { %298 = vperm.xlu0 %871, %v260_v10   ;;  %455 = vmatpush.msra.mxu0 %v254_v11  ;;  %v279_v47 = vld [vmem:[%s1311_s2 + $0xa0] sm:$0xff]  ;;  %v277_v49 = vld [vmem:[%s1311_s2 + $0x90] sm:$0xff]  ;;  %v214_v50 = vld [vmem:[#allocation2 + $0x18] sm:$0xff] }
  0x29   : > { %764 = vmatpush.msra.mxu1 %v254_v11  ;;  %765 = vmatpush.msra.mxu2 %v254_v11  ;;  %v222_v51 = vld [vmem:[#allocation2 + $0x58] sm:$0xff]  ;;  %v281_v55 = vld [vmem:[%s1311_s2 + $0xb0] sm:$0xff]  ;;  %v280_v56 = vld [vmem:[%s1311_s2 + $0xa8] sm:$0xff] }
  0x2a   : > { %766 = vmatpush.msra.mxu3 %v254_v11  ;;  %456 = vmatpush.msra.mxu0 %v253_v12  ;;  %v230_v52 = vld [vmem:[#allocation2 + $0x98] sm:$0xff]  ;;  %v215_v57 = vld [vmem:[#allocation2 + $0x20] sm:$0xff]  ;;  %v285_v61 = vld [vmem:[%s1311_s2 + $0xd0] sm:$0xff] }
  0x2b   : > { %767 = vmatpush.msra.mxu1 %v253_v12  ;;  %768 = vmatpush.msra.mxu2 %v253_v12  ;;  %v238_v53 = vld [vmem:[#allocation2 + $0xd8] sm:$0xff]  ;;  %v223_v58 = vld [vmem:[#allocation2 + $0x60] sm:$0xff]  ;;  %v284_v62 = vld [vmem:[%s1311_s2 + $0xc8] sm:$0xff] }
  0x2c   : > { %769 = vmatpush.msra.mxu3 %v253_v12  ;;  %457 = vmatpush.msra.mxu0 %v252_v13  ;;  %v282_v54 = vld [vmem:[%s1311_s2 + $0xb8] sm:$0xff]  ;;  %v231_v59 = vld [vmem:[#allocation2 + $0xa0] sm:$0xff]  ;;  %v216_v0 = vld [vmem:[#allocation2 + $0x28] sm:$0xff] }
  0x2d   : > { %770 = vmatpush.msra.mxu1 %v252_v13  ;;  %771 = vmatpush.msra.mxu2 %v252_v13  ;;  %v239_v60 = vld [vmem:[#allocation2 + $0xe0] sm:$0xff]  ;;  %v224_v1 = vld [vmem:[#allocation2 + $0x68] sm:$0xff]  ;;  %v286_v6 = vld [vmem:[%s1311_s2 + $0xd8] sm:$0xff] }
  0x2e   : > { %772 = vmatpush.msra.mxu3 %v252_v13  ;;  %458 = vmatpush.msra.mxu0 %v251_v14  ;;  %v283_v63 = vld [vmem:[%s1311_s2 + $0xc0] sm:$0xff]  ;;  %v232_v2 = vld [vmem:[#allocation2 + $0xa8] sm:$0xff]  ;;  %v217_v7 = vld [vmem:[#allocation2 + $0x30] sm:$0xff] }
  0x2f   : > { %773 = vmatpush.msra.mxu1 %v251_v14  ;;  %774 = vmatpush.msra.mxu2 %v251_v14  ;;  %v240_v3 = vld [vmem:[#allocation2 + $0xe8] sm:$0xff]  ;;  %v287_v5 = vld [vmem:[%s1311_s2 + $0xe0] sm:$0xff]  ;;  %v225_v8 = vld [vmem:[#allocation2 + $0x70] sm:$0xff] }
  0x30   : > { %775 = vmatpush.msra.mxu3 %v251_v14  ;;  %333 = vperm.xlu2 %873, %v267_v15   ;;  %v288_v4 = vld [vmem:[%s1311_s2 + $0xe8] sm:$0xff]  ;;  %v233_v9 = vld [vmem:[#allocation2 + $0xb0] sm:$0xff]  ;;  %v290_v11 = vld [vmem:[%s1311_s2 + $0xf8] sm:$0xff] }
  0x31   : > { %328 = vperm.xlu1 %872, %v266_v16   ;;  %323 = vperm.xlu0 %871, %v265_v17   ;;  %v241_v10 = vld [vmem:[#allocation2 + $0xf0] sm:$0xff]  ;;  %v218_v13 = vld [vmem:[#allocation2 + $0x38] sm:$0xff] }
  0x32   : > { %459 = vmatpush.msra.mxu0 %v250_v18  ;;  %776 = vmatpush.msra.mxu1 %v250_v18  ;;  %v289_v12 = vld [vmem:[%s1311_s2 + $0xf0] sm:$0xff]  ;;  %v226_v14 = vld [vmem:[#allocation2 + $0x78] sm:$0xff] }
  0x33   : > { %777 = vmatpush.msra.mxu2 %v250_v18  ;;  %778 = vmatpush.msra.mxu3 %v250_v18  ;;  %v234_v15 = vld [vmem:[#allocation2 + $0xb8] sm:$0xff] }
  0x34   : > { %460 = vmatpush.msra.mxu0 %v249_v19  ;;  %779 = vmatpush.msra.mxu1 %v249_v19  ;;  %v242_v16 = vld [vmem:[#allocation2 + $0xf8] sm:$0xff] }
  0x35   : > { %780 = vmatpush.msra.mxu2 %v249_v19  ;;  %781 = vmatpush.msra.mxu3 %v249_v19 }
  0x36   : > { %461 = vmatpush.msra.mxu0 %v248_v20  ;;  %782 = vmatpush.msra.mxu1 %v248_v20 }
  0x37   : > { %783 = vmatpush.msra.mxu2 %v248_v20  ;;  %784 = vmatpush.msra.mxu3 %v248_v20 }
  0x38   : > { %462 = vmatpush.msra.mxu0 %v247_v21  ;;  %785 = vmatpush.msra.mxu1 %v247_v21 }
  0x39   : > { %786 = vmatpush.msra.mxu2 %v247_v21  ;;  %787 = vmatpush.msra.mxu3 %v247_v21 }
  0x3a   : > { %348 = vperm.xlu2 %873, %v270_v22   ;;  %343 = vperm.xlu1 %872, %v269_v23  }
  0x3b   : > { %338 = vperm.xlu0 %871, %v268_v24   ;;  %463 = vmatpush.msra.mxu0 %v246_v25 }
  0x3c   : > { %788 = vmatpush.msra.mxu1 %v246_v25  ;;  %789 = vmatpush.msra.mxu2 %v246_v25 }
  0x3d   : > { %790 = vmatpush.msra.mxu3 %v246_v25  ;;  %464 = vmatpush.msra.mxu0 %v245_v26 }
  0x3e   : > { %791 = vmatpush.msra.mxu1 %v245_v26  ;;  %792 = vmatpush.msra.mxu2 %v245_v26 }
  0x3f   : > { %793 = vmatpush.msra.mxu3 %v245_v26  ;;  %465 = vmatpush.msra.mxu0 %v244_v27 }
  0x40   : > { %794 = vmatpush.msra.mxu1 %v244_v27  ;;  %795 = vmatpush.msra.mxu2 %v244_v27 }
  0x41   : > { %796 = vmatpush.msra.mxu3 %v244_v27  ;;  %466 = vmatpush.msra.mxu0 %v243_v28 }
  0x42   : > { %797 = vmatpush.msra.mxu1 %v243_v28  ;;  %798 = vmatpush.msra.mxu2 %v243_v28 }
  0x43   : > { %799 = vmatpush.msra.mxu3 %v243_v28  ;;  %467 = vmatmul.f32.vlgmr.msra.gmra.mxu0 %v211_v29 }
  0x44   : > { %491 = vmatmul.f32.vlgmr.msra.gmra.mxu1 %v219_v30  ;;  %515 = vmatmul.f32.vlgmr.msra.gmra.mxu2 %v227_v31 }
  0x45   : > { %539 = vmatmul.f32.vlgmr.msra.gmra.mxu3 %v235_v32  ;;  %363 = vperm.xlu2 %873, %v273_v33  }
  0x46   : > { %358 = vperm.xlu1 %872, %v272_v34   ;;  %353 = vperm.xlu0 %871, %v271_v35  }
  0x4b   : > { %470 = vmatmul.f32.gmra.mxu0 %v212_v36 }
  0x4c   : > { %494 = vmatmul.f32.gmra.mxu1 %v220_v37  ;;  %518 = vmatmul.f32.gmra.mxu2 %v228_v38 }
  0x4d   : > { %542 = vmatmul.f32.gmra.mxu3 %v236_v39  ;;  %378 = vperm.xlu2 %873, %v276_v40  }
  0x4e   : > { %373 = vperm.xlu1 %872, %v275_v41   ;;  %368 = vperm.xlu0 %871, %v274_v42  }
  0x53   : > { %473 = vmatmul.f32.gmra.mxu0 %v213_v43 }
  0x54   : > { %497 = vmatmul.f32.gmra.mxu1 %v221_v44  ;;  %521 = vmatmul.f32.gmra.mxu2 %v229_v45 }
  0x55   : > { %545 = vmatmul.f32.gmra.mxu3 %v237_v46  ;;  %393 = vperm.xlu2 %873, %v279_v47  }
  0x56   : > { %388 = vperm.xlu1 %872, %v278_v48   ;;  %383 = vperm.xlu0 %871, %v277_v49  }
  0x5b   : > { %476 = vmatmul.f32.gmra.mxu0 %v214_v50 }
  0x5c   : > { %500 = vmatmul.f32.gmra.mxu1 %v222_v51  ;;  %524 = vmatmul.f32.gmra.mxu2 %v230_v52 }
  0x5d   : > { %548 = vmatmul.f32.gmra.mxu3 %v238_v53  ;;  %408 = vperm.xlu2 %873, %v282_v54  }
  0x5e   : > { %403 = vperm.xlu1 %872, %v281_v55   ;;  %398 = vperm.xlu0 %871, %v280_v56  }
  0x63   : > { %479 = vmatmul.f32.gmra.mxu0 %v215_v57 }
  0x64   : > { %503 = vmatmul.f32.gmra.mxu1 %v223_v58  ;;  %527 = vmatmul.f32.gmra.mxu2 %v231_v59 }
  0x65   : > { %551 = vmatmul.f32.gmra.mxu3 %v239_v60  ;;  %423 = vperm.xlu2 %873, %v285_v61  }
  0x66   : > { %418 = vperm.xlu1 %872, %v284_v62   ;;  %413 = vperm.xlu0 %871, %v283_v63  }
  0x6b   : > { %482 = vmatmul.f32.gmra.mxu0 %v216_v0 }
  0x6c   : > { %506 = vmatmul.f32.gmra.mxu1 %v224_v1  ;;  %530 = vmatmul.f32.gmra.mxu2 %v232_v2 }
  0x6d   : > { %554 = vmatmul.f32.gmra.mxu3 %v240_v3  ;;  %438 = vperm.xlu2 %873, %v288_v4  }
  0x6e   : > { %433 = vperm.xlu1 %872, %v287_v5   ;;  %428 = vperm.xlu0 %871, %v286_v6  }
  0x73   : > { %485 = vmatmul.f32.gmra.mxu0 %v217_v7 }
  0x74   : > { %509 = vmatmul.f32.gmra.mxu1 %v225_v8  ;;  %533 = vmatmul.f32.gmra.mxu2 %v233_v9  ;;  %v1191_v17 = vpop.permute.xlu2 %313 }
  0x75   : > { %557 = vmatmul.f32.gmra.mxu3 %v241_v10 }
  0x76   : > { %448 = vperm.xlu1 %872, %v290_v11   ;;  %443 = vperm.xlu0 %871, %v289_v12  }
  0x7b   : > { %488 = vmatmul.f32.gmra.mxu0 %v218_v13 }
  0x7c   : > { %512 = vmatmul.f32.gmra.mxu1 %v226_v14  ;;  %536 = vmatmul.f32.gmra.mxu2 %v234_v15 }
  0x7d   : > { %560 = vmatmul.f32.gmra.mxu3 %v242_v16 }
  0x81   : > { %v1193_v20 = vpop.permute.xlu2 %318 }
  0x8a   : > { %v334_v23 = vpop.permute.xlu2 %333 }
  0x8d   : > { %v304_v18 = vpop.permute.xlu1 %303  ;;  %v294_v19 = vpop.permute.xlu0 %293 }
  0x94   : > { %v1201_v26 = vpop.permute.xlu2 %348 }
  0x99   : > { %v1195_v21 = vpop.permute.xlu1 %308 }
  0x9a   : > { %v299_v22 = vpop.permute.xlu0 %298 }
  0x9f   : > { %v1203_v29 = vpop.permute.xlu2 %363 }
  0xa3   : > { %v1197_v24 = vpop.permute.xlu1 %328  ;;  %v1199_v25 = vpop.permute.xlu0 %323 }
  0xa7   : > { %v379_v32 = vpop.permute.xlu2 %378 }
  0xac   : > { %v344_v27 = vpop.permute.xlu1 %343 }
  0xad   : > { %v339_v28 = vpop.permute.xlu0 %338 }
  0xaf   : > { %v1214_v39 = vpop.permute.xlu2 %393 }
  0xb7   : > { %v1220_v53 = vpop.permute.xlu2 %408 }
  0xb8   : > { %v1205_v30 = vpop.permute.xlu1 %358  ;;  %v1207_v31 = vpop.permute.xlu0 %353 }
  0xbf   : > { %v424_v3 = vpop.permute.xlu2 %423 }
  0xc0   : > { %v374_v33 = vpop.permute.xlu1 %373  ;;  %v1212_v34 = vpop.permute.xlu0 %368 }
  0xc1   : > { %v468_v35 = vpop.f32.mrf.mxu0  ;;  %v492_v37 = vpop.f32.mrf.mxu1 }
  0xc2   : > { %v469_v36 = vadd.f32 %v468_v35, %v294_v19  ;;  %v493_v38 = vadd.f32 %v492_v37, %v334_v23 }
  0xc4   : > { %v564_v40 = vmax.f32 %v469_v36, 0.0  ;;  %v572_v41 = vmax.f32 %v493_v38, 0.0 }
  0xc6   : > { %596 = vst [vmem:[%s1216_s9] sm:$0xff] %v564_v40 }
  0xc7   : > { %604 = vst [vmem:[%s1216_s9 + $0x40] sm:$0xff] %v572_v41  ;;  %v516_v44 = vpop.f32.mrf.mxu2 }
  0xc8   : > { %v389_v42 = vpop.permute.xlu1 %388  ;;  %v384_v43 = vpop.permute.xlu0 %383  ;;  %v517_v45 = vadd.f32 %v516_v44, %v374_v33 }
  0xc9   : > { %v540_v46 = vpop.f32.mrf.mxu3  ;;  %v471_v47 = vpop.f32.mrf.mxu0 }
  0xca   : > { %v472_v48 = vadd.f32 %v471_v47, %v299_v22  ;;  %v495_v49 = vpop.f32.mrf.mxu1  ;;  %v580_v50 = vmax.f32 %v517_v45, 0.0 }
  0xcb   : > { %v496_v51 = vadd.f32 %v495_v49, %v339_v28 }
  0xcc   : > { %v565_v52 = vmax.f32 %v472_v48, 0.0  ;;  %612 = vst [vmem:[%s1216_s9 + $0x80] sm:$0xff] %v580_v50 }
  0xcd   : > { %v573_v54 = vmax.f32 %v496_v51, 0.0 }
  0xce   : > { %597 = vst [vmem:[%s1216_s9 + $0x8] sm:$0xff] %v565_v52 }
  0xcf   : > { %605 = vst [vmem:[%s1216_s9 + $0x48] sm:$0xff] %v573_v54  ;;  %v519_v57 = vpop.f32.mrf.mxu2 }
  0xd0   : > { %v1225_v55 = vpop.permute.xlu1 %403  ;;  %v1227_v56 = vpop.permute.xlu0 %398  ;;  %v520_v58 = vadd.f32 %v519_v57, %v379_v32 }
  0xd1   : > { %v543_v59 = vpop.f32.mrf.mxu3  ;;  %v474_v60 = vpop.f32.mrf.mxu0 }
  0xd2   : > { %v475_v61 = vadd.f32 %v474_v60, %v304_v18  ;;  %v498_v62 = vpop.f32.mrf.mxu1  ;;  %v581_v63 = vmax.f32 %v520_v58, 0.0  ;;  %v439_v58 = vpop.permute.xlu2 %438 }
  0xd3   : > { %v499_v0 = vadd.f32 %v498_v62, %v344_v27 }
  0xd4   : > { %v566_v1 = vmax.f32 %v475_v61, 0.0  ;;  %613 = vst [vmem:[%s1216_s9 + $0x88] sm:$0xff] %v581_v63 }
  0xd5   : > { %v574_v2 = vmax.f32 %v499_v0, 0.0 }
  0xd6   : > { %598 = vst [vmem:[%s1216_s9 + $0x10] sm:$0xff] %v566_v1 }
  0xd7   : > { %606 = vst [vmem:[%s1216_s9 + $0x50] sm:$0xff] %v574_v2  ;;  %v522_v7 = vpop.f32.mrf.mxu2 }
  0xd8   : > { %v419_v4 = vpop.permute.xlu1 %418  ;;  %v414_v6 = vpop.permute.xlu0 %413  ;;  %v523_v9 = vadd.f32 %v522_v7, %v384_v43 }
  0xd9   : > { %v544_v5 = vadd.f32 %v543_v59, %v419_v4  ;;  %v541_v8 = vadd.f32 %v540_v46, %v414_v6  ;;  %v546_v10 = vpop.f32.mrf.mxu3  ;;  %v477_v11 = vpop.f32.mrf.mxu0 }
  0xda   : > { %v547_v13 = vadd.f32 %v546_v10, %v424_v3  ;;  %v478_v14 = vadd.f32 %v477_v11, %v1195_v21  ;;  %v501_v15 = vpop.f32.mrf.mxu1  ;;  %v582_v18 = vmax.f32 %v523_v9, 0.0 }
  0xdb   : > { %v589_v12 = vmax.f32 %v544_v5, 0.0  ;;  %v588_v16 = vmax.f32 %v541_v8, 0.0  ;;  %v502_v19 = vadd.f32 %v501_v15, %v1201_v26 }
  0xdc   : > { %v590_v22 = vmax.f32 %v547_v13, 0.0  ;;  %v567_v23 = vmax.f32 %v478_v14, 0.0  ;;  %614 = vst [vmem:[%s1216_s9 + $0x90] sm:$0xff] %v582_v18 }
  0xdd   : > { %621 = vst [vmem:[%s1216_s9 + $0xc8] sm:$0xff] %v589_v12  ;;  %v575_v27 = vmax.f32 %v502_v19, 0.0 }
  0xde   : > { %620 = vst [vmem:[%s1216_s9 + $0xc0] sm:$0xff] %v588_v16 }
  0xdf   : > { %622 = vst [vmem:[%s1216_s9 + $0xd0] sm:$0xff] %v590_v22  ;;  %v525_v32 = vpop.f32.mrf.mxu2 }
  0xe0   : > { %599 = vst [vmem:[%s1216_s9 + $0x18] sm:$0xff] %v567_v23  ;;  %v429_v28 = vpop.permute.xlu0 %428  ;;  %v526_v21 = vadd.f32 %v525_v32, %v389_v42  ;;  %v434_v45 = vpop.permute.xlu1 %433 }
  0xe1   : > { %607 = vst [vmem:[%s1216_s9 + $0x58] sm:$0xff] %v575_v27  ;;  %v549_v33 = vpop.f32.mrf.mxu3  ;;  %v480_v35 = vpop.f32.mrf.mxu0 }
  0xe2   : > { %v550_v36 = vadd.f32 %v549_v33, %v429_v28  ;;  %v481_v26 = vadd.f32 %v480_v35, %v1191_v17  ;;  %v504_v37 = vpop.f32.mrf.mxu1  ;;  %v583_v38 = vmax.f32 %v526_v21, 0.0 }
  0xe3   : > { %v505_v40 = vadd.f32 %v504_v37, %v1207_v31 }
  0xe4   : > { %v591_v41 = vmax.f32 %v550_v36, 0.0  ;;  %v568_v43 = vmax.f32 %v481_v26, 0.0  ;;  %615 = vst [vmem:[%s1216_s9 + $0x98] sm:$0xff] %v583_v38 }
  0xe5   : > { %v576_v44 = vmax.f32 %v505_v40, 0.0 }
  0xe6   : > { %623 = vst [vmem:[%s1216_s9 + $0xd8] sm:$0xff] %v591_v41 }
  0xe7   : > { %600 = vst [vmem:[%s1216_s9 + $0x20] sm:$0xff] %v568_v43  ;;  %v528_v42 = vpop.f32.mrf.mxu2 }
  0xe8   : > { %608 = vst [vmem:[%s1216_s9 + $0x60] sm:$0xff] %v576_v44  ;;  %v529_v46 = vadd.f32 %v528_v42, %v1214_v39  ;;  %v444_v4 = vpop.permute.xlu0 %443 }
  0xe9   : > { %v552_v17 = vpop.f32.mrf.mxu3  ;;  %v483_v47 = vpop.f32.mrf.mxu0 }
  0xea   : > { %v553_v48 = vadd.f32 %v552_v17, %v434_v45  ;;  %v484_v31 = vadd.f32 %v483_v47, %v1193_v20  ;;  %v507_v49 = vpop.f32.mrf.mxu1  ;;  %v584_v50 = vmax.f32 %v529_v46, 0.0 }
  0xeb   : > { %v508_v51 = vadd.f32 %v507_v49, %v1205_v30 }
  0xec   : > { %v592_v52 = vmax.f32 %v553_v48, 0.0  ;;  %v569_v54 = vmax.f32 %v484_v31, 0.0  ;;  %616 = vst [vmem:[%s1216_s9 + $0xa0] sm:$0xff] %v584_v50 }
  0xed   : > { %v577_v57 = vmax.f32 %v508_v51, 0.0 }
  0xee   : > { %624 = vst [vmem:[%s1216_s9 + $0xe0] sm:$0xff] %v592_v52 }
  0xef   : > { %601 = vst [vmem:[%s1216_s9 + $0x28] sm:$0xff] %v569_v54  ;;  %v531_v39 = vpop.f32.mrf.mxu2 }
  0xf0   : > { %609 = vst [vmem:[%s1216_s9 + $0x68] sm:$0xff] %v577_v57  ;;  %v532_v59 = vadd.f32 %v531_v39, %v1227_v56 }
  0xf1   : > { %v555_v20 = vpop.f32.mrf.mxu3  ;;  %v486_v60 = vpop.f32.mrf.mxu0 }
  0xf2   : > { %v556_v61 = vadd.f32 %v555_v20, %v439_v58  ;;  %v487_v30 = vadd.f32 %v486_v60, %v1199_v25  ;;  %v510_v62 = vpop.f32.mrf.mxu1  ;;  %v585_v63 = vmax.f32 %v532_v59, 0.0 }
  0xf3   : > { %v511_v0 = vadd.f32 %v510_v62, %v1203_v29 }
  0xf4   : > { %v593_v1 = vmax.f32 %v556_v61, 0.0  ;;  %v570_v2 = vmax.f32 %v487_v30, 0.0  ;;  %617 = vst [vmem:[%s1216_s9 + $0xa8] sm:$0xff] %v585_v63 }
  0xf5   : > { %v578_v3 = vmax.f32 %v511_v0, 0.0 }
  0xf6   : > { %625 = vst [vmem:[%s1216_s9 + $0xe8] sm:$0xff] %v593_v1 }
  0xf7   : > { %602 = vst [vmem:[%s1216_s9 + $0x30] sm:$0xff] %v570_v2  ;;  %v534_v56 = vpop.f32.mrf.mxu2 }
  0xf8   : > { %610 = vst [vmem:[%s1216_s9 + $0x70] sm:$0xff] %v578_v3  ;;  %v535_v5 = vadd.f32 %v534_v56, %v1225_v55  ;;  %v449_v55 = vpop.permute.xlu1 %448 }
  0xf9   : > { %v558_v25 = vpop.f32.mrf.mxu3  ;;  %v489_v6 = vpop.f32.mrf.mxu0 }
  0xfa   : > { %v559_v29 = vadd.f32 %v558_v25, %v444_v4  ;;  %v490_v7 = vadd.f32 %v489_v6, %v1197_v24  ;;  %v513_v8 = vpop.f32.mrf.mxu1  ;;  %v586_v9 = vmax.f32 %v535_v5, 0.0 }
  0xfb   : > { %v514_v10 = vadd.f32 %v513_v8, %v1212_v34 }
  0xfc   : > { %v594_v11 = vmax.f32 %v559_v29, 0.0  ;;  %v571_v12 = vmax.f32 %v490_v7, 0.0  ;;  %618 = vst [vmem:[%s1216_s9 + $0xb0] sm:$0xff] %v586_v9 }
  0xfd   : > { %v579_v13 = vmax.f32 %v514_v10, 0.0 }
  0xfe   : > { %626 = vst [vmem:[%s1216_s9 + $0xf0] sm:$0xff] %v594_v11 }
  0xff   : > { %603 = vst [vmem:[%s1216_s9 + $0x38] sm:$0xff] %v571_v12  ;;  %v537_v24 = vpop.f32.mrf.mxu2 }
 0x100   : > { %611 = vst [vmem:[%s1216_s9 + $0x78] sm:$0xff] %v579_v13  ;;  %v538_v34 = vadd.f32 %v537_v24, %v1220_v53 }
 0x101   : > { %v561_v14 = vpop.f32.mrf.mxu3 }
 0x102   : > { %v562_v15 = vadd.f32 %v561_v14, %v449_v55  ;;  %v587_v16 = vmax.f32 %v538_v34, 0.0 }
 0x104   : > { %v595_v18 = vmax.f32 %v562_v15, 0.0  ;;  %619 = vst [vmem:[%s1216_s9 + $0xb8] sm:$0xff] %v587_v16 }
 0x106   : > { %627 = vst [vmem:[%s1216_s9 + $0xf8] sm:$0xff] %v595_v18 }
 0x107   : > { %931 = shalt.err (!%p928_p9)
}
 0x108   : > { %s992_s6 = smov 128   ;;  %s993_s7 = smov 8  }
 0x109   : > { %804 = dma.vmem_to_hbm [thread:$0]  (%p1054_p4), %s643_s23, 4096, %s645_s15, %s629_s26, %s992_s6, %s992_s6, %s993_s7  }
 0x10a PF: > { %p816_p10 = scmp.ge.s32.totalorder %s986_s17, 2  ;;  %s659_s8 = sand.u32 1, %s966_s12  }
 0x10b   : > { %s660_s9 = scalar_lea.sflag [#allocation4], %s659_s8 }
 0x10c   : > { %p811_p11 = pnand %p816_p10, %p1061_p8 }
 0x10e   : > { %p812_p12 = pneg %p811_p11 }
 0x110   : > { %961 = dma.done.wait (%p812_p12), %s660_s9, 4096  }
 0x111   : > { %963 = vsyncadd (%p812_p12), %s660_s9, 4294963200  ;;  %s17_s17 = sadd.s32 1, %s986_s17   ;;  %s1315_s12 = smov %s970_s13 }
 0x112   : > { %p14_p13 = scmp.ge.s32.totalorder %s17_s17, 4   ;;  %s1316_s13 = smov %s974_s14 }
 0x113   : > { %s1317_s14 = smov %s1067_s25  ;;  %s1318_s15 = smov %s982_s16 }
 0x114   : > { %s1319_s16 = smov %s1321_s20  ;;  %16 = sbr.rel (!%p14_p13) target bundleno = 5 (0x5), region = 72 }
 0x119   :  { %666 = vsyncpa [#allocation3], 1 }
 0x11a   :  { %668 = vsyncpa [#allocation3 + $0x1], 1 }
 0x11b   :  { %669 = vsyncpa [#allocation4], 1 }
 0x11c   :  { %671 = vsyncpa [#allocation4 + $0x1], 1 }

</bundles_post_ra>
